<compile_context>
chip_gen: v6e
topology: v6e:2x2x1
jax: 0.10.0
libtpu: 0.0.40
codegen_flags: <defaults>
</compile_context>

<pallas_src>
import jax
import jax.numpy as jnp
from jax import lax
from jax.experimental import pallas as pl
from jax.experimental.pallas import tpu as pltpu


def _round_up(x, m):
    return ((x + m - 1) // m) * m


def _hybrid_kernel(labrow_ref, colidx_ref, colv_ref, clsidx_ref,
                   zq_ref, zkt_ref, labq_ref, pred_ref,
                   out_nt_ref, out_ce_ref,
                   ntt_ref, ces_ref):
    split = pl.program_id(0)            # row-range half (megacore split)
    r = pl.program_id(2)                # row tile within the half (reduction axis)
    rh = pl.num_programs(2)
    tm = zq_ref.shape[0]

    # ---- per-(split, stream) init --------------------------------------------
    @pl.when(r == 0)
    def _():
        ntt_ref[...] = jnp.zeros_like(ntt_ref)
        ces_ref[...] = jnp.zeros_like(ces_ref)

    # ---- NT-Xent row tile ------------------------------------------------------
    # zq / zkt hold L2-normalized, 1/sqrt(T)-scaled bf16 projections, so the MXU
    # directly emits sim = cos(z_i, z_j) / T accumulated in f32.
    sim = jnp.dot(zq_ref[...], zkt_ref[...],
                  preferred_element_type=jnp.float32)            # (tm, n_pad)

    labq = labq_ref[...]                                         # (tm, 1) int32
    same = labrow_ref[...] == labq                               # (tm, n_pad) bool
    row_ids = (split * rh + r) * tm + lax.broadcasted_iota(jnp.int32, (tm, 1), 0)
    colv = colv_ref[...]                                         # (1, n_pad) f32
    # positive pairs: same label, not the diagonal, column valid.  Padded query
    # rows (label -1) never match a valid column, so no row_valid term is needed.
    pos_f = jnp.where(same & (colidx_ref[...] != row_ids), colv, 0.0)

    m = jnp.max(sim, axis=-1, keepdims=True)
    p = sim - m                                                  # == log(e)
    e = jnp.exp(p)
    neg_sum = jnp.sum(jnp.where(same, 0.0, colv) * e, axis=-1, keepdims=True)
    pair_loss = jnp.log(e + neg_sum) - p                         # (tm, n_pad)
    ntt_ref[...] += jnp.sum(pair_loss * pos_f, axis=0, keepdims=True)   # (1, n_pad)

    # ---- Cross-entropy row tile ------------------------------------------------
    logits = pred_ref[...].astype(jnp.float32)                   # (tm, c_pad)
    mc = jnp.max(logits, axis=-1, keepdims=True)
    lse = jnp.log(jnp.sum(jnp.exp(logits - mc), axis=-1, keepdims=True)) + mc
    onehot = clsidx_ref[...] == labq                             # padded labels (-1) never match
    ces_ref[...] += jnp.sum(jnp.where(onehot, lse - logits, 0.0),
                            axis=0, keepdims=True)               # (1, c_pad)

    # ---- finalize once per (split, stream): single cross-lane reduce + one
    #      unmasked lane-dense store --------------------------------------------
    @pl.when(r == rh - 1)
    def _():
        out_nt_ref[...] = jnp.broadcast_to(
            jnp.sum(ntt_ref[...], axis=1, keepdims=True), (1, 128))
        out_ce_ref[...] = jnp.broadcast_to(
            jnp.sum(ces_ref[...], axis=1, keepdims=True), (1, 128))


def hybrid_loss_dual_aug_and_original(projections1, projections2, projections3,
                                      predictions1, predictions2, predictions3,
                                      labels, *,
                                      temperature=0.1,
                                      contrastive_weight=0.3,
                                      classifier_1_weight=1.0,
                                      classifier_2_weight=1.0,
                                      classifier_3_weight=1.0,
                                      tm=128,
                                      n_splits=2):
    """Returns the 6 weighted losses of HybridLossWithDualAugAndOriginal."""
    proj = jnp.stack([projections1, projections2, projections3]).astype(jnp.float32)
    pred = jnp.stack([predictions1, predictions2, predictions3]).astype(jnp.float32)
    lab = labels.astype(jnp.int32)

    n, d = int(proj.shape[1]), int(proj.shape[2])
    c = int(pred.shape[2])

    tm_eff = min(tm, _round_up(n, 8))
    n_pad = _round_up(n, tm_eff * n_splits)
    d_pad = _round_up(d, 128)
    c_pad = _round_up(c, 128)
    rh = n_pad // (tm_eff * n_splits)

    # L2-normalize, fold 1/sqrt(T), cast to bf16 for the MXU; pad rows with zeros
    # (they stay exactly zero).  Key matrix is pre-transposed (D_pad, N_pad).
    inv_sqrt_t = jnp.float32(1.0 / float(temperature) ** 0.5)
    zn = proj * (lax.rsqrt(jnp.sum(proj * proj, axis=-1, keepdims=True) + 1e-12)
                 * inv_sqrt_t)
    zn_p = jnp.pad(zn, ((0, 0), (0, n_pad - n), (0, d_pad - d))).astype(jnp.bfloat16)
    znt_p = jnp.transpose(zn_p, (0, 2, 1))                        # (3, d_pad, n_pad)

    # pad classes with a large negative (softmax ignores them); padded rows are
    # excluded via the -1 label padding.
    pred_p = jnp.pad(pred, ((0, 0), (0, 0), (0, c_pad - c)), constant_values=-1e9)
    pred_p = jnp.pad(pred_p, ((0, 0), (0, n_pad - n), (0, 0)))

    lab_p = jnp.pad(lab, (0, n_pad - n), constant_values=-1)
    lab_row = lab_p.reshape(1, n_pad)                             # lane-dense key labels
    lab_col = lab_p.reshape(n_pad, 1)                             # query labels (column)
    col_idx = jnp.arange(n_pad, dtype=jnp.int32).reshape(1, n_pad)
    col_valid = (jnp.arange(n_pad) < n).astype(jnp.float32).reshape(1, n_pad)
    cls_idx = jnp.arange(c_pad, dtype=jnp.int32).reshape(1, c_pad)

    out_nt, out_ce = pl.pallas_call(
        _hybrid_kernel,
        out_shape=(jax.ShapeDtypeStruct((n_splits, 3, 1, 128), jnp.float32),
                   jax.ShapeDtypeStruct((n_splits, 3, 1, 128), jnp.float32)),
        grid=(n_splits, 3, rh),
        in_specs=[
            pl.BlockSpec((1, n_pad), lambda i, s, r: (0, 0)),                       # key labels
            pl.BlockSpec((1, n_pad), lambda i, s, r: (0, 0)),                       # column indices
            pl.BlockSpec((1, n_pad), lambda i, s, r: (0, 0)),                       # column validity
            pl.BlockSpec((1, c_pad), lambda i, s, r: (0, 0)),                       # class indices
            pl.BlockSpec((None, tm_eff, d_pad), lambda i, s, r: (s, i * rh + r, 0)),  # query tile
            pl.BlockSpec((None, d_pad, n_pad), lambda i, s, r: (s, 0, 0)),            # key matrix^T
            pl.BlockSpec((tm_eff, 1), lambda i, s, r: (i * rh + r, 0)),               # query labels
            pl.BlockSpec((None, tm_eff, c_pad), lambda i, s, r: (s, i * rh + r, 0)),  # logits tile
        ],
        out_specs=(
            pl.BlockSpec((None, None, 1, 128), lambda i, s, r: (i, s, 0, 0)),
            pl.BlockSpec((None, None, 1, 128), lambda i, s, r: (i, s, 0, 0)),
        ),
        scratch_shapes=[
            pltpu.VMEM((1, n_pad), jnp.float32),    # NT-Xent lane-wide partial sums
            pltpu.VMEM((1, c_pad), jnp.float32),    # cross-entropy lane-wide partial sums
        ],
        compiler_params=pltpu.CompilerParams(
            dimension_semantics=("parallel", "parallel", "arbitrary"),
            vmem_limit_bytes=48 * 1024 * 1024),
    )(lab_row, col_idx, col_valid, cls_idx, zn_p, znt_p, lab_col, pred_p)

    # ---- wrapper-side scalars: pair count, means, weights -----------------------
    nt_sum = jnp.sum(out_nt[:, :, 0, 0], axis=0)                  # (3,)
    ce_sum = jnp.sum(out_ce[:, :, 0, 0], axis=0)                  # (3,)

    same_full = lab[:, None] == lab[None, :]
    pos_count = jnp.sum(same_full.astype(jnp.float32)) - jnp.float32(n)

    nt_mean = jnp.where(pos_count > 0.0,
                        nt_sum / jnp.maximum(pos_count, 1.0),
                        jnp.zeros_like(nt_sum))
    ce_mean = ce_sum / jnp.float32(n)

    cw = jnp.float32(contrastive_weight)
    wx = jnp.array([classifier_1_weight, classifier_2_weight, classifier_3_weight],
                   jnp.float32)
    return (cw * nt_mean[0], cw * nt_mean[1], cw * nt_mean[2],
            wx[0] * ce_mean[0], wx[1] * ce_mean[1], wx[2] * ce_mean[2])


# ------------------------------ pure-JAX reference ------------------------------
def _reference(p1, p2, p3, q1, q2, q3, labels, *, temperature=0.1,
               contrastive_weight=0.3, classifier_weights=(1.0, 1.0, 1.0)):
    def ntxent(z):
        z = z.astype(jnp.float32)
        z = z / jnp.sqrt(jnp.sum(z * z, axis=-1, keepdims=True) + 1e-12)
        sim = (z @ z.T) / temperature
        y = labels.reshape(-1, 1)
        same = y == y.T
        eye = jnp.eye(sim.shape[0], dtype=bool)
        pos = same & ~eye
        neg = ~same
        m = jnp.max(sim, axis=-1, keepdims=True)
        e = jnp.exp(sim - m)
        ns = jnp.sum(jnp.where(neg, e, 0.0), axis=-1, keepdims=True)
        pls = jnp.log(e + ns) + m - sim
        cnt = jnp.sum(pos)
        return jnp.where(cnt > 0,
                         jnp.sum(jnp.where(pos, pls, 0.0)) / jnp.maximum(cnt, 1),
                         0.0)

    def ce(logits):
        logits = logits.astype(jnp.float32)
        lse = jax.scipy.special.logsumexp(logits, axis=-1)
        picked = jnp.take_along_axis(logits, labels.reshape(-1, 1), axis=-1)[:, 0]
        return jnp.mean(lse - picked)

    w1, w2, w3 = classifier_weights
    return (contrastive_weight * ntxent(p1),
            contrastive_weight * ntxent(p2),
            contrastive_weight * ntxent(p3),
            w1 * ce(q1), w2 * ce(q2), w3 * ce(q3))


if __name__ == "__main__":
    key = jax.random.PRNGKey(0)
    ks = jax.random.split(key, 14)

    # Contrastive losses use a bf16 MXU path -> looser tolerance vs f32 reference;
    # cross-entropy stays f32 end-to-end.
    NT_TOL = dict(rtol=2e-2, atol=2e-2)
    CE_TOL = dict(rtol=1e-4, atol=1e-4)

    # ---- test 1: small shapes, default module weights ---------------------------
    N, D, C = 8, 32, 16
    p1 = jax.random.normal(ks[0], (N, D), jnp.float32)
    p2 = jax.random.normal(ks[1], (N, D), jnp.float32)
    p3 = jax.random.normal(ks[2], (N, D), jnp.float32)
    q1 = jax.random.normal(ks[3], (N, C), jnp.float32)
    q2 = jax.random.normal(ks[4], (N, C), jnp.float32)
    q3 = jax.random.normal(ks[5], (N, C), jnp.float32)
    labels = jax.random.randint(ks[6], (N,), 0, 4, jnp.int32)

    outs = hybrid_loss_dual_aug_and_original(p1, p2, p3, q1, q2, q3, labels)
    jax.block_until_ready(outs)
    refs = _reference(p1, p2, p3, q1, q2, q3, labels)
    for idx, (o, rf) in enumerate(zip(outs, refs)):
        tol = NT_TOL if idx < 3 else CE_TOL
        assert jnp.allclose(o, rf, **tol), (idx, o, rf)

    # ---- test 2: padding path (N not a tile multiple), multiple row tiles per
    #              core split, non-default weights/temperature ---------------------
    N2, D2, C2 = 19, 40, 12
    r1 = jax.random.normal(ks[7], (N2, D2), jnp.float32)
    r2 = jax.random.normal(ks[8], (N2, D2), jnp.float32)
    r3 = jax.random.normal(ks[9], (N2, D2), jnp.float32)
    t1 = jax.random.normal(ks[10], (N2, C2), jnp.float32)
    t2 = jax.random.normal(ks[11], (N2, C2), jnp.float32)
    t3 = jax.random.normal(ks[12], (N2, C2), jnp.float32)
    labels2 = jax.random.randint(ks[13], (N2,), 0, 4, jnp.int32)

    outs2 = hybrid_loss_dual_aug_and_original(
        r1, r2, r3, t1, t2, t3, labels2,
        temperature=0.2, contrastive_weight=0.25,
        classifier_1_weight=1.0, classifier_2_weight=0.5, classifier_3_weight=2.0,
        tm=8)
    jax.block_until_ready(outs2)
    refs2 = _reference(r1, r2, r3, t1, t2, t3, labels2,
                       temperature=0.2, contrastive_weight=0.25,
                       classifier_weights=(1.0, 0.5, 2.0))
    for idx, (o, rf) in enumerate(zip(outs2, refs2)):
        tol = NT_TOL if idx < 3 else CE_TOL
        assert jnp.allclose(o, rf, **tol), (idx, o, rf)

    print("KERNEL_OK")
</pallas_src>

<mosaic_0001>
module attributes {stable_mosaic.version = 11 : i64} {
  func.func @_hybrid_kernel(%arg0: i32, %arg1: i32, %arg2: i32, %arg3: memref<1x16xi32, #tpu.memory_space<vmem>>, %arg4: memref<1x16xi32, #tpu.memory_space<vmem>>, %arg5: memref<1x16xf32, #tpu.memory_space<vmem>>, %arg6: memref<1x128xi32, #tpu.memory_space<vmem>>, %arg7: memref<1x8x128xbf16, #tpu.memory_space<vmem>>, %arg8: memref<1x128x16xbf16, #tpu.memory_space<vmem>>, %arg9: memref<8x1xi32, #tpu.memory_space<vmem>>, %arg10: memref<1x8x128xf32, #tpu.memory_space<vmem>>, %arg11: memref<1x1x1x128xf32, #tpu.memory_space<vmem>>, %arg12: memref<1x1x1x128xf32, #tpu.memory_space<vmem>>, %arg13: memref<1x16xf32, #tpu.memory_space<vmem>>, %arg14: memref<1x128xf32, #tpu.memory_space<vmem>>) attributes {dimension_semantics = [#tpu.dimension_semantics<parallel>, #tpu.dimension_semantics<parallel>, #tpu.dimension_semantics<arbitrary>], iteration_bounds = array<i64: 2, 3, 1>, scalar_prefetch = 0 : i64, scratch_operands = 2 : i64, tpu.core_type = #tpu.core_type<tc>, window_params = [{pipeline_mode = #tpu.pipeline_mode<synchronous>, transform_indices = @transform_0, window_bounds = array<i64: 1, 16>}, {pipeline_mode = #tpu.pipeline_mode<synchronous>, transform_indices = @transform_1, window_bounds = array<i64: 1, 16>}, {pipeline_mode = #tpu.pipeline_mode<synchronous>, transform_indices = @transform_2, window_bounds = array<i64: 1, 16>}, {pipeline_mode = #tpu.pipeline_mode<synchronous>, transform_indices = @transform_3, window_bounds = array<i64: 1, 128>}, {transform_indices = @transform_4, window_bounds = array<i64: 1, 8, 128>}, {transform_indices = @transform_5, window_bounds = array<i64: 1, 128, 16>}, {transform_indices = @transform_6, window_bounds = array<i64: 8, 1>}, {transform_indices = @transform_7, window_bounds = array<i64: 1, 8, 128>}, {transform_indices = @transform_8, window_bounds = array<i64: 1, 1, 1, 128>}, {transform_indices = @transform_9, window_bounds = array<i64: 1, 1, 1, 128>}]} {
    %c0_i32 = arith.constant 0 : i32
    %0 = arith.cmpi eq, %arg2, %c0_i32 : i32
    %1 = arith.extui %0 : i1 to i32
    %c0_i32_0 = arith.constant 0 : i32
    %2 = arith.cmpi ne, %1, %c0_i32_0 : i32
    scf.if %2 {
      %cst_38 = arith.constant 0.000000e+00 : f32
      %78 = vector.broadcast %cst_38 : f32 to vector<1x16xf32>
      %c0_39 = arith.constant 0 : index
      %c0_40 = arith.constant 0 : index
      %79 = vector.load %arg13[%c0_39, %c0_40] : memref<1x16xf32, #tpu.memory_space<vmem>>, vector<1x16xf32>
      tpu.vector_store %arg13[%c0_39, %c0_40], %78 {strides = array<i32>} : memref<1x16xf32, #tpu.memory_space<vmem>>, vector<1x16xf32>,
      %cst_41 = arith.constant 0.000000e+00 : f32
      %80 = vector.broadcast %cst_41 : f32 to vector<1x128xf32>
      %c0_42 = arith.constant 0 : index
      %c0_43 = arith.constant 0 : index
      %81 = vector.load %arg14[%c0_42, %c0_43] : memref<1x128xf32, #tpu.memory_space<vmem>>, vector<1x128xf32>
      tpu.vector_store %arg14[%c0_42, %c0_43], %80 {strides = array<i32>} : memref<1x128xf32, #tpu.memory_space<vmem>>, vector<1x128xf32>,
    } else {
    }
    %c0 = arith.constant 0 : index
    %c0_1 = arith.constant 0 : index
    %c0_2 = arith.constant 0 : index
    %3 = vector.load %arg7[%c0, %c0_1, %c0_2] : memref<1x8x128xbf16, #tpu.memory_space<vmem>>, vector<1x8x128xbf16>
    %4 = vector.shape_cast %3 : vector<1x8x128xbf16> to vector<8x128xbf16>
    %c0_3 = arith.constant 0 : index
    %c0_4 = arith.constant 0 : index
    %c0_5 = arith.constant 0 : index
    %5 = vector.load %arg8[%c0_3, %c0_4, %c0_5] : memref<1x128x16xbf16, #tpu.memory_space<vmem>>, vector<1x128x16xbf16>
    %6 = vector.shape_cast %5 : vector<1x128x16xbf16> to vector<128x16xbf16>
    %cst = arith.constant dense<0.000000e+00> : vector<8x16xf32>
    %7 = tpu.matmul %4, %6, %cst {dimension_numbers = #tpu.dot_dimension_numbers<[1], [0], [0], [1], [0, 0, 1, 1], [], []>} : vector<8x128xbf16>, vector<128x16xbf16>, vector<8x16xf32> -> vector<8x16xf32>
    %c0_6 = arith.constant 0 : index
    %c0_7 = arith.constant 0 : index
    %8 = vector.load %arg9[%c0_6, %c0_7] : memref<8x1xi32, #tpu.memory_space<vmem>>, vector<8x1xi32>
    %c0_8 = arith.constant 0 : index
    %c0_9 = arith.constant 0 : index
    %9 = vector.load %arg3[%c0_8, %c0_9] : memref<1x16xi32, #tpu.memory_space<vmem>>, vector<1x16xi32>
    %10 = vector.broadcast %9 : vector<1x16xi32> to vector<8x16xi32>
    %11 = vector.broadcast %8 : vector<8x1xi32> to vector<8x16xi32>
    %12 = arith.cmpi eq, %10, %11 : vector<8x16xi32>
    %c1_i32 = arith.constant 1 : i32
    %13 = arith.muli %arg0, %c1_i32 : i32
    %14 = arith.addi %13, %arg2 : i32
    %c8_i32 = arith.constant 8 : i32
    %15 = arith.muli %14, %c8_i32 : i32
    %16 = tpu.iota {dimensions = array<i32: 0>} : vector<8x1xi32>
    %17 = vector.broadcast %15 : i32 to vector<8x1xi32>
    %18 = arith.addi %17, %16 : vector<8x1xi32>
    %c0_10 = arith.constant 0 : index
    %c0_11 = arith.constant 0 : index
    %19 = vector.load %arg5[%c0_10, %c0_11] : memref<1x16xf32, #tpu.memory_space<vmem>>, vector<1x16xf32>
    %c0_12 = arith.constant 0 : index
    %c0_13 = arith.constant 0 : index
    %20 = vector.load %arg4[%c0_12, %c0_13] : memref<1x16xi32, #tpu.memory_space<vmem>>, vector<1x16xi32>
    %21 = vector.broadcast %20 : vector<1x16xi32> to vector<8x16xi32>
    %22 = vector.broadcast %18 : vector<8x1xi32> to vector<8x16xi32>
    %23 = arith.cmpi ne, %21, %22 : vector<8x16xi32>
    %24 = arith.andi %12, %23 : vector<8x16xi1>
    %cst_14 = arith.constant 0.000000e+00 : f32
    %25 = vector.shape_cast %19 : vector<1x16xf32> to vector<1x16xf32>
    %26 = vector.broadcast %25 : vector<1x16xf32> to vector<8x16xf32>
    %27 = vector.broadcast %cst_14 : f32 to vector<8x16xf32>
    %28 = arith.select %24, %26, %27 : vector<8x16xi1>, vector<8x16xf32>
    %cst_15 = arith.constant dense<0xFF800000> : vector<8xf32>
    %29 = vector.multi_reduction <maximumf>, %7, %cst_15 [1] : vector<8x16xf32> to vector<8xf32>
    %30 = vector.shape_cast %29 : vector<8xf32> to vector<8x1xf32>
    %31 = vector.broadcast %30 : vector<8x1xf32> to vector<8x16xf32>
    %32 = arith.subf %7, %31 : vector<8x16xf32>
    %33 = math.exp %32 : vector<8x16xf32>
    %cst_16 = arith.constant 0.000000e+00 : f32
    %34 = vector.broadcast %cst_16 : f32 to vector<8x16xf32>
    %35 = vector.shape_cast %19 : vector<1x16xf32> to vector<1x16xf32>
    %36 = vector.broadcast %35 : vector<1x16xf32> to vector<8x16xf32>
    %37 = arith.select %12, %34, %36 : vector<8x16xi1>, vector<8x16xf32>
    %38 = arith.mulf %37, %33 : vector<8x16xf32>
    %cst_17 = arith.constant dense<0.000000e+00> : vector<8xf32>
    %39 = vector.multi_reduction <add>, %38, %cst_17 [1] : vector<8x16xf32> to vector<8xf32>
    %40 = vector.shape_cast %39 : vector<8xf32> to vector<8x1xf32>
    %41 = vector.broadcast %40 : vector<8x1xf32> to vector<8x16xf32>
    %42 = arith.addf %33, %41 : vector<8x16xf32>
    %43 = math.log %42 : vector<8x16xf32>
    %44 = arith.subf %43, %32 : vector<8x16xf32>
    %c0_18 = arith.constant 0 : index
    %c0_19 = arith.constant 0 : index
    %45 = vector.load %arg13[%c0_18, %c0_19] : memref<1x16xf32, #tpu.memory_space<vmem>>, vector<1x16xf32>
    %46 = arith.mulf %44, %28 : vector<8x16xf32>
    %cst_20 = arith.constant dense<0.000000e+00> : vector<16xf32>
    %47 = vector.multi_reduction <add>, %46, %cst_20 [0] : vector<8x16xf32> to vector<16xf32>
    %48 = vector.shape_cast %47 : vector<16xf32> to vector<1x16xf32>
    %49 = arith.addf %45, %48 : vector<1x16xf32>
    %c0_21 = arith.constant 0 : index
    %c0_22 = arith.constant 0 : index
    %50 = vector.load %arg13[%c0_21, %c0_22] : memref<1x16xf32, #tpu.memory_space<vmem>>, vector<1x16xf32>
    tpu.vector_store %arg13[%c0_21, %c0_22], %49 {strides = array<i32>} : memref<1x16xf32, #tpu.memory_space<vmem>>, vector<1x16xf32>,
    %c0_23 = arith.constant 0 : index
    %c0_24 = arith.constant 0 : index
    %c0_25 = arith.constant 0 : index
    %51 = vector.load %arg10[%c0_23, %c0_24, %c0_25] : memref<1x8x128xf32, #tpu.memory_space<vmem>>, vector<1x8x128xf32>
    %52 = vector.shape_cast %51 : vector<1x8x128xf32> to vector<8x128xf32>
    %cst_26 = arith.constant dense<0xFF800000> : vector<8xf32>
    %53 = vector.multi_reduction <maximumf>, %52, %cst_26 [1] : vector<8x128xf32> to vector<8xf32>
    %54 = vector.shape_cast %53 : vector<8xf32> to vector<8x1xf32>
    %55 = vector.broadcast %54 : vector<8x1xf32> to vector<8x128xf32>
    %56 = arith.subf %52, %55 : vector<8x128xf32>
    %57 = math.exp %56 : vector<8x128xf32>
    %cst_27 = arith.constant dense<0.000000e+00> : vector<8xf32>
    %58 = vector.multi_reduction <add>, %57, %cst_27 [1] : vector<8x128xf32> to vector<8xf32>
    %59 = vector.shape_cast %58 : vector<8xf32> to vector<8x1xf32>
    %60 = math.log %59 : vector<8x1xf32>
    %61 = arith.addf %60, %54 : vector<8x1xf32>
    %c0_28 = arith.constant 0 : index
    %c0_29 = arith.constant 0 : index
    %62 = vector.load %arg6[%c0_28, %c0_29] : memref<1x128xi32, #tpu.memory_space<vmem>>, vector<1x128xi32>
    %63 = vector.broadcast %62 : vector<1x128xi32> to vector<8x128xi32>
    %64 = vector.broadcast %8 : vector<8x1xi32> to vector<8x128xi32>
    %65 = arith.cmpi eq, %63, %64 : vector<8x128xi32>
    %c0_30 = arith.constant 0 : index
    %c0_31 = arith.constant 0 : index
    %66 = vector.load %arg14[%c0_30, %c0_31] : memref<1x128xf32, #tpu.memory_space<vmem>>, vector<1x128xf32>
    %67 = vector.broadcast %61 : vector<8x1xf32> to vector<8x128xf32>
    %68 = arith.subf %67, %52 : vector<8x128xf32>
    %cst_32 = arith.constant 0.000000e+00 : f32
    %69 = vector.broadcast %cst_32 : f32 to vector<8x128xf32>
    %70 = arith.select %65, %68, %69 : vector<8x128xi1>, vector<8x128xf32>
    %cst_33 = arith.constant dense<0.000000e+00> : vector<128xf32>
    %71 = vector.multi_reduction <add>, %70, %cst_33 [0] : vector<8x128xf32> to vector<128xf32>
    %72 = vector.shape_cast %71 : vector<128xf32> to vector<1x128xf32>
    %73 = arith.addf %66, %72 : vector<1x128xf32>
    %c0_34 = arith.constant 0 : index
    %c0_35 = arith.constant 0 : index
    %74 = vector.load %arg14[%c0_34, %c0_35] : memref<1x128xf32, #tpu.memory_space<vmem>>, vector<1x128xf32>
    tpu.vector_store %arg14[%c0_34, %c0_35], %73 {strides = array<i32>} : memref<1x128xf32, #tpu.memory_space<vmem>>, vector<1x128xf32>,
    %c0_i32_36 = arith.constant 0 : i32
    %75 = arith.cmpi eq, %arg2, %c0_i32_36 : i32
    %76 = arith.extui %75 : i1 to i32
    %c0_i32_37 = arith.constant 0 : i32
    %77 = arith.cmpi ne, %76, %c0_i32_37 : i32
    scf.if %77 {
      %c0_38 = arith.constant 0 : index
      %c0_39 = arith.constant 0 : index
      %78 = vector.load %arg13[%c0_38, %c0_39] : memref<1x16xf32, #tpu.memory_space<vmem>>, vector<1x16xf32>
      %cst_40 = arith.constant dense<0.000000e+00> : vector<1xf32>
      %79 = vector.multi_reduction <add>, %78, %cst_40 [1] : vector<1x16xf32> to vector<1xf32>
      %80 = vector.shape_cast %79 : vector<1xf32> to vector<1x1xf32>
      %81 = vector.shape_cast %80 : vector<1x1xf32> to vector<1x1xf32>
      %82 = vector.broadcast %81 : vector<1x1xf32> to vector<1x128xf32>
      %c0_41 = arith.constant 0 : index
      %c0_42 = arith.constant 0 : index
      %c0_43 = arith.constant 0 : index
      %c0_44 = arith.constant 0 : index
      %83 = vector.load %arg11[%c0_41, %c0_42, %c0_43, %c0_44] : memref<1x1x1x128xf32, #tpu.memory_space<vmem>>, vector<1x1x1x128xf32>
      %84 = vector.shape_cast %83 : vector<1x1x1x128xf32> to vector<1x128xf32>
      %85 = vector.shape_cast %82 : vector<1x128xf32> to vector<1x1x1x128xf32>
      tpu.vector_store %arg11[%c0_41, %c0_42, %c0_43, %c0_44], %85 {strides = array<i32>} : memref<1x1x1x128xf32, #tpu.memory_space<vmem>>, vector<1x1x1x128xf32>,
      %c0_45 = arith.constant 0 : index
      %c0_46 = arith.constant 0 : index
      %86 = vector.load %arg14[%c0_45, %c0_46] : memref<1x128xf32, #tpu.memory_space<vmem>>, vector<1x128xf32>
      %cst_47 = arith.constant dense<0.000000e+00> : vector<1xf32>
      %87 = vector.multi_reduction <add>, %86, %cst_47 [1] : vector<1x128xf32> to vector<1xf32>
      %88 = vector.shape_cast %87 : vector<1xf32> to vector<1x1xf32>
      %89 = vector.shape_cast %88 : vector<1x1xf32> to vector<1x1xf32>
      %90 = vector.broadcast %89 : vector<1x1xf32> to vector<1x128xf32>
      %c0_48 = arith.constant 0 : index
      %c0_49 = arith.constant 0 : index
      %c0_50 = arith.constant 0 : index
      %c0_51 = arith.constant 0 : index
      %91 = vector.load %arg12[%c0_48, %c0_49, %c0_50, %c0_51] : memref<1x1x1x128xf32, #tpu.memory_space<vmem>>, vector<1x1x1x128xf32>
      %92 = vector.shape_cast %91 : vector<1x1x1x128xf32> to vector<1x128xf32>
      %93 = vector.shape_cast %90 : vector<1x128xf32> to vector<1x1x1x128xf32>
      tpu.vector_store %arg12[%c0_48, %c0_49, %c0_50, %c0_51], %93 {strides = array<i32>} : memref<1x1x1x128xf32, #tpu.memory_space<vmem>>, vector<1x1x1x128xf32>,
    } else {
    }
    return
  }
  func.func @transform_0(%arg0: i32, %arg1: i32, %arg2: i32) -> (i32, i32) {
    %c0_i32 = arith.constant 0 : i32
    %c0_i32_0 = arith.constant 0 : i32
    %c0_i32_1 = arith.constant 0 : i32
    return %c0_i32, %c0_i32_0 : i32, i32
  }
  func.func @transform_1(%arg0: i32, %arg1: i32, %arg2: i32) -> (i32, i32) {
    %c0_i32 = arith.constant 0 : i32
    %c0_i32_0 = arith.constant 0 : i32
    %c0_i32_1 = arith.constant 0 : i32
    return %c0_i32, %c0_i32_0 : i32, i32
  }
  func.func @transform_2(%arg0: i32, %arg1: i32, %arg2: i32) -> (i32, i32) {
    %c0_i32 = arith.constant 0 : i32
    %c0_i32_0 = arith.constant 0 : i32
    %c0_i32_1 = arith.constant 0 : i32
    return %c0_i32, %c0_i32_0 : i32, i32
  }
  func.func @transform_3(%arg0: i32, %arg1: i32, %arg2: i32) -> (i32, i32) {
    %c0_i32 = arith.constant 0 : i32
    %c0_i32_0 = arith.constant 0 : i32
    %c0_i32_1 = arith.constant 0 : i32
    return %c0_i32, %c0_i32_0 : i32, i32
  }
  func.func @transform_4(%arg0: i32, %arg1: i32, %arg2: i32) -> (i32, i32, i32) {
    %c1_i32 = arith.constant 1 : i32
    %0 = arith.muli %arg0, %c1_i32 : i32
    %1 = arith.addi %0, %arg2 : i32
    %c0_i32 = arith.constant 0 : i32
    %c0_i32_0 = arith.constant 0 : i32
    return %arg1, %1, %c0_i32 : i32, i32, i32
  }
  func.func @transform_5(%arg0: i32, %arg1: i32, %arg2: i32) -> (i32, i32, i32) {
    %c0_i32 = arith.constant 0 : i32
    %c0_i32_0 = arith.constant 0 : i32
    %c0_i32_1 = arith.constant 0 : i32
    return %arg1, %c0_i32, %c0_i32_0 : i32, i32, i32
  }
  func.func @transform_6(%arg0: i32, %arg1: i32, %arg2: i32) -> (i32, i32) {
    %c1_i32 = arith.constant 1 : i32
    %0 = arith.muli %arg0, %c1_i32 : i32
    %1 = arith.addi %0, %arg2 : i32
    %c0_i32 = arith.constant 0 : i32
    %c0_i32_0 = arith.constant 0 : i32
    return %1, %c0_i32 : i32, i32
  }
  func.func @transform_7(%arg0: i32, %arg1: i32, %arg2: i32) -> (i32, i32, i32) {
    %c1_i32 = arith.constant 1 : i32
    %0 = arith.muli %arg0, %c1_i32 : i32
    %1 = arith.addi %0, %arg2 : i32
    %c0_i32 = arith.constant 0 : i32
    %c0_i32_0 = arith.constant 0 : i32
    return %arg1, %1, %c0_i32 : i32, i32, i32
  }
  func.func @transform_8(%arg0: i32, %arg1: i32, %arg2: i32) -> (i32, i32, i32, i32) {
    %c0_i32 = arith.constant 0 : i32
    %c0_i32_0 = arith.constant 0 : i32
    %c0_i32_1 = arith.constant 0 : i32
    return %arg0, %arg1, %c0_i32, %c0_i32_0 : i32, i32, i32, i32
  }
  func.func @transform_9(%arg0: i32, %arg1: i32, %arg2: i32) -> (i32, i32, i32, i32) {
    %c0_i32 = arith.constant 0 : i32
    %c0_i32_0 = arith.constant 0 : i32
    %c0_i32_1 = arith.constant 0 : i32
    return %arg0, %arg1, %c0_i32, %c0_i32_0 : i32, i32, i32, i32
  }
}

</mosaic_0001>

<bundles_post_ra>
// kernel: tpu_custom_call.1
= control target key start
LH: loop header
LB: loop body
LE: loop exit
PB: predicated region body
PF: predicated region fallthrough
CT: control target
= control target key end

     0   :  { %s1416_s0 = inlined_call_operand.vmem [shape: s32[1,16], index: 0, kind: input, shape index: {}]   ;;  %s1417_s1 = inlined_call_operand.vmem [shape: s32[1,16], index: 1, kind: input, shape index: {}]   ;;  %s1418_s2 = inlined_call_operand.vmem [shape: f32[1,16], index: 2, kind: input, shape index: {}]   ;;  %s1419_s3 = inlined_call_operand.vmem [shape: s32[1,128], index: 3, kind: input, shape index: {}]   ;;  %s1420_s4 = inlined_call_operand.vmem [shape: bf16[3,16,128], index: 4, kind: input, shape index: {}]   ;;  %s1421_s5 = inlined_call_operand.vmem [shape: bf16[3,128,16], index: 5, kind: input, shape index: {}]   ;;  %s1422_s6 = inlined_call_operand.vmem [shape: s32[16,1], index: 6, kind: input, shape index: {}]   ;;  %s1423_s7 = inlined_call_operand.vmem [shape: f32[3,16,128], index: 7, kind: input, shape index: {}]   ;;  %s1424_s8 = inlined_call_operand.hbm [shape: f32[2,3,1,128], index: 8, kind: output, shape index: {0}]   ;;  %s1425_s9 = inlined_call_operand.hbm [shape: f32[2,3,1,128], index: 9, kind: output, shape index: {1}]  }
   0x1   :  { %1431 = sst [smem:[#allocation13_spill]] %s1416_s0 }
   0x2   :  { %1432 = sst [smem:[#allocation14_spill]] %s1417_s1 }
   0x3   :  { %1433 = sst [smem:[#allocation15_spill]] %s1421_s5 }
   0x4   :  { %15 = vsyncpa [#allocation5], 0 }
   0x5   :  { %17 = vsyncpa [#allocation5 + $0x1], 0 }
   0x6   :  { %18 = vsyncpa [#allocation7], 0 }
   0x7   :  { %20 = vsyncpa [#allocation7 + $0x1], 0  ;;  %s1197_s30 = smov 0   ;;  %s1199_s10 = smov 0  }
   0x8   :  { %s1201_s11 = smov 0   ;;  %s1203_s12 = smov 0  }
   0x9   :  { %s1205_s13 = smov 0   ;;  %s1207_s14 = smov 0  }
   0xa   :  { %s1209_s15 = smov 0   ;;  %s1211_s16 = smov 0  }
   0xb LB: > { %1434 = sst [smem:[#allocation10_spill]] %s1136_s15  ;;  %s860_s17 = sadd.s32 4294967295, %s1140_s16   ;;  %s1140_s16 = sphi %s1211_s16, %s26_s16   ;;  %s1136_s15 = sphi %s1209_s15, %s1448_s15   ;;  %s1132_s14 = sphi %s1207_s14, %s1453_s14   ;;  %s1128_s13 = sphi %s1205_s13, %s1446_s13   ;;  %s1124_s12 = sphi %s1203_s12, %s1452_s12   ;;  %s1120_s11 = sphi %s1201_s11, %s1451_s11   ;;  %s1116_s10 = sphi %s1199_s10, %s1450_s10   ;;  %s1112_s30 = sphi %s1197_s30, %s1449_s30  }
   0xc   : > { %s861_s18 = sadd.s32 4294967294, %s1140_s16   ;;  %s41_s19 = sadd.s32 1, %s1132_s14 }
   0xd   : > { %p43_p0 = scmp.ge.s32.totalorder %s41_s19, 3  ;;  %s45_s20 = sadd.s32 1, %s1136_s15 }
   0xe   : > { %p262_p1 = scmp.ne.s32.totalorder %s1120_s11, %s1116_s10  ;;  %p263_p2 = scmp.eq.s32.totalorder %s860_s17, 5 }
   0xf   : > { %s1455_s19 = smov (%p43_p0, %s41_s19), 0  ;;  %s1457_s20 = smov (!%p43_p0, %s45_s20), %s1136_s15 }
  0x10   : > { %1435 = sst [smem:[#allocation11_spill]] %s1455_s19  ;;  %s248_s21 = ssub.s32 %s1132_s14, %s1455_s19 }
  0x11   : > { %p1248_p3 = por %p263_p2, %p262_p1  ;;  %p47_p4 = scmp.ge.s32.totalorder %s1457_s20, 2 }
  0x12   : > { %p268_p5 = scmp.ne.s32.totalorder %s1116_s10, %s1112_s30  ;;  %p269_p6 = scmp.eq.s32.totalorder %s861_s18, 5 }
  0x13   : > { %p864_p7 = scmp.ge.s32.totalorder %s1140_s16, 1  ;;  %s1459_s20 = smov (%p47_p4, %s1457_s20), 0 }
  0x14   : > { %1437 = sst [smem:[#allocation12_spill]] %s1459_s20  ;;  %p1257_p8 = por %p269_p6, %p268_p5 }
  0x15   : > { %p370_p9 = scmp.lt.s32.totalorder %s1140_s16, 7  ;;  %s247_s24 = ssub.s32 %s1136_s15, %s1459_s20 }
  0x16   : > { %s252_s25 = sadd.s32 1, %s1120_s11  ;;  %s249_s26 = sor.u32 %s248_s21, %s247_s24 }
  0x17   : > { %p371_p10 = pnand %p864_p7, %p370_p9  ;;  %p250_p11 = scmp.eq.s32.totalorder %s249_s26, 0 }
  0x18   : > { %p433_p12 = scmp.lt.s32.totalorder (!%p371_p10), %s1124_s12, 2  ;;  %s1439_s5 = sld [smem:[#allocation15_spill]] (!%p371_p10) }
  0x19   : > { %s1266_s27 = scalar_select %p250_p11, %s1120_s11, %s252_s25  }
  0x1a   : > { %374 = sbr.rel (%p371_p10) target bundleno = 778 (0x30a), region = 52  ;;  %p435_p13 = scmp.lt.s32.totalorder (!%p371_p10), %s1128_s13, 1 }
  0x1b   : > { %s1440_s0 = sld [smem:[#allocation13_spill]] (!%p371_p10)  ;;  %s1322_s17 = sand.u32 (!%p371_p10), 1, %s1116_s10  }
  0x1c   : > { %s1441_s1 = sld [smem:[#allocation14_spill]] (!%p371_p10) }
  0x1f   : > { %v1142_v0 = vmov 0.0   ;;  %vm1143_vm0 = vmmov 0   ;;  %s434_s28 = scalar_select %p433_p12, %s1124_s12, 2  ;;  %v1144_v10 = vmov 0   ;;  %vm607_vm1 = vcmask 130048  }
  0x20   : > { %899 = vmatprep.subr.bf16.mxu0 %v1142_v0  ;;  %470 = vst [vmem:[#allocation3] sm:$0x1] %v1142_v0  ;;  %915 = vmatprep.mubr.msk.bf16.mxu0 %vm1143_vm0, %v1142_v0  ;;  %s436_s24 = scalar_select %p435_p13, %s1128_s13, 1  ;;  %v588_v18 = vlaneseq  ;;  %v883_v25 = vld [vmem:[%s1418_s2] ss:$0 sm:$0xff]  ;;  %vm468_vm5 = vcmask 122880  }
  0x21   : > { %s889_s29 = sshll.u32 %s434_s28, 6  ;;  %s865_s25 = sshll.u32 %s434_s28, 1  ;;  %1000 = vset.pattern.permute.xlu1 %v1144_v10  ;;  %1001 = vset.pattern.permute.xlu0 %v1144_v10  ;;  %v880_v19 = vld [vmem:[%s1440_s0] ss:$0 sm:$0xff]  ;;  %469 = vst.msk [vmem:[#allocation2] sm:$0x1] %vm468_vm5, %v1142_v0 }
  0x22   : > { %s446_s21 = scalar_lea.vmem %s1439_s5, %s889_s29  ;;  %s438_s26 = sadd.s32 %s865_s25, %s436_s24  ;;  %v589_v22 = vshrl.u32 %v588_v18, 7  ;;  %v882_v23 = vld [vmem:[%s1441_s1] ss:$0 sm:$0xff]  ;;  %vm672_vm7 = vcmask 1040384  }
  0x23   : > { %v1002_v1 = vld [vmem:[%s446_s21 + $0x38] sm:$0xff]   ;;  %v1003_v2 = vld [vmem:[%s446_s21 + $0x30] sm:$0xff]   ;;  %v1004_v3 = vld [vmem:[%s446_s21 + $0x28] sm:$0xff]   ;;  %s866_s29 = sshll.u32 %s438_s26, 2  ;;  %s869_s28 = sshll.u32 %s436_s24, 3 }
  0x24   : > { %900 = vmatpush3.bf16.msra.mxu0 %v1002_v1  ;;  %v1005_v4 = vld [vmem:[%s446_s21 + $0x20] sm:$0xff]   ;;  %v1006_v5 = vld [vmem:[%s446_s21 + $0x18] sm:$0xff]   ;;  %v1007_v6 = vld [vmem:[%s446_s21 + $0x10] sm:$0xff]   ;;  %s440_s5 = scalar_lea.vmem %s1420_s4, %s866_s29  ;;  %s451_s19 = scalar_lea.vmem %s1422_s6, %s869_s28 }
  0x25   : > { %901 = vmatprep.subr.bf16.mxu0 %v1142_v0  ;;  %v1008_v7 = vld [vmem:[%s446_s21 + $0x8] sm:$0xff]   ;;  %v1009_v8 = vld [vmem:[%s446_s21] sm:$0xff]   ;;  %s871_s21 = sshll.u32 %s438_s26, 3  ;;  %s1145_s25 = smov [#allocation4]  }
  0x26   : > { %v471_v9 = vld [vmem:[%s440_s5] sm:$0xf]  ;;  %s461_s29 = scalar_lea.vmem %s1423_s7, %s871_s21  ;;  %s881_s5 = sshll.u32 %s1128_s13, 3 }
  0x27   : > { %v576_v11 = vld [vmem:[%s451_s19] sm:$0xff]  ;;  %v590_v20 = vstv %s881_s5  ;;  %s919_s21 = smul.u32 3, %s1128_s13  ;;  %s425_s5 = scalar_lea.vmem [#allocation4], %s1322_s17 }
  0x28   : > { %902 = vmatpush3.bf16.msra.mxu0 %v1003_v2  ;;  %583 = vperm.xlu1 %1000, %v576_v11   ;;  %v635_v15 = vld [vmem:[%s461_s29] sm:$0xff]  ;;  %v591_v24 = vadd.s32 %v590_v20, %v589_v22  ;;  %s696_s20 = sshll.u32 %s425_s5, 4  ;;  %s1429_s13 = scalar_lea.vmem [#allocation6], %s1322_s17  ;;  %s1329_s20 = int_to_ptr.vmem [resolvable:$true] %s696_s20 }
  0x29   : > { %903 = vmatprep.subr.bf16.mxu0 %v1142_v0  ;;  %v884_v46 = vld [vmem:[%s1419_s3] ss:$0 sm:$0xff]  ;;  %v652_v63 = vld [vmem:[#allocation3] sm:$0x1]  ;;  %s1325_s29 = sadd.s32 %s1124_s12, %s919_s21  ;;  %s711_s24 = sshll.u32 %s1429_s13, 4  ;;  %s1341_s24 = int_to_ptr.vmem [resolvable:$true] %s711_s24 }
  0x2a   : > { %vm598_vm3 = vcmp.ne.s32.totalorder %v882_v23, %v591_v24  ;;  %v623_v1 = vld [vmem:[#allocation2] sm:$0x1]  ;;  %s1430_s19 = sshll.u32 %s1325_s29, 4  ;;  %s678_s12 = scalar_lea.sflag [#allocation5], %s1322_s17 }
  0x2b   : > { %s1339_s18 = scalar_lea.hbm %s1424_s8, %s1430_s19  ;;  %s1018_s28 = scalar_lea.vmem %s1329_s20, 16 }
  0x2c   : > { %904 = vmatpush3.bf16.msra.mxu0 %v1004_v3  ;;  %p1019_p0 = scmp.ne.s32.totalorder %s1329_s20, %s1018_s28  ;;  %s1022_s21 = sshll.u32 %s1145_s25, 4  ;;  %s1023_s21 = int_to_ptr.vmem [resolvable:$false] %s1022_s21 }
  0x2d   : > { %905 = vmatprep.subr.bf16.mxu0 %v1142_v0  ;;  %s1024_s13 = scalar_lea.vmem %s1023_s21, 32  ;;  %p1025_p4 = scmp.lt.s32.totalorder %s1329_s20, %s1023_s21 }
  0x2e   : > { %p1020_p1 = pnand %p1019_p0, %p1248_p3  ;;  %p1026_p5 = scmp.lt.s32.totalorder %s1024_s13, %s1018_s28 }
  0x30   : > { %906 = vmatpush3.bf16.msra.mxu0 %v1005_v4  ;;  %p1021_p2 = pneg %p1020_p1  ;;  %p1027_p6 = por %p1026_p5, %p1025_p4 }
  0x31   : > { %907 = vmatprep.subr.bf16.mxu0 %v1142_v0 }
  0x32   : > { %p1028_p7 = pnand %p1027_p6, %p1021_p2 }
  0x34   : > { %908 = vmatpush3.bf16.msra.mxu0 %v1006_v5 }
  0x35   : > { %909 = vmatprep.subr.bf16.mxu0 %v1142_v0 }
  0x38   : > { %910 = vmatpush3.bf16.msra.mxu0 %v1007_v6 }
  0x39   : > { %911 = vmatprep.subr.bf16.mxu0 %v1142_v0 }
  0x3c   : > { %912 = vmatpush3.bf16.msra.mxu0 %v1008_v7 }
  0x3d   : > { %913 = vmatprep.subr.bf16.mxu0 %v1142_v0 }
  0x40   : > { %914 = vmatpush3.bf16.msra.mxu0 %v1009_v8 }
  0x43   : > { %916 = vmatmul.mubr.bf16.vlgmr.msra.gmra.mxu0 %v471_v9 }
  0xa3   : > { %v584_v21 = vpop.permute.xlu1 %583 }
  0xa4   : > { %vm585_vm2 = vcmp.eq.s32.totalorder %v880_v19, %v584_v21  ;;  %vm651_vm6 = vcmp.eq.s32.totalorder %v884_v46, %v584_v21 }
  0xa5   : > { %vm1305_vm4 = vmand %vm585_vm2, %vm598_vm3  ;;  %v614_v34 = vsel %vm585_vm2, 0.0, %v883_v25 }
  0xa6   : > { %v606_v27 = vsel %vm1305_vm4, %v883_v25, 0.0 }
 0x103   : > { %v570_v12 = vpop.f32.mrf.mxu0 }
 0x104   : > { %v608_v13 = vsel %vm607_vm1, %v570_v12, -inf }
 0x105   : > { %609 = vmax.xlane.f32.xlu0 %v608_v13  ;;  %v917_v14 = vpop.f32.mrf.mxu0 }
 0x107   : > { %v573_v16 = vpop.f32.mrf.mxu0 }
 0x109   : > { %636 = vmax.xlane.f32.xlu0 %v635_v15  ;;  %v918_v17 = vpop.f32.mrf.mxu0 }
 0x18e   : > { %v610_v28 = vpop.xlane.xlu0 %609 }
 0x18f   : > { %v611_v29 = vsub.f32 %v570_v12, %v610_v28 }
 0x191   : > { %v612_v30 = vmul.f32 1.442695, %v611_v29 }
 0x192   : > { %v637_v31 = vpop.xlane.xlu0 %636 }
 0x193   : > { %1010 = vpow2.f32 %v612_v30  ;;  %v638_v32 = vsub.f32 %v635_v15, %v637_v31 }
 0x195   : > { %v639_v33 = vmul.f32 1.442695, %v638_v32 }
 0x197   : > { %1012 = vpow2.f32 %v639_v33 }
 0x1a0   : > { %v1011_v35 = vpop.eup %1010 }
 0x1a1   : > { %v615_v36 = vmul.f32 %v1011_v35, %v614_v34 }
 0x1a3   : > { %v616_v37 = vsel %vm607_vm1, %v615_v36, 0.0 }
 0x1a4   : > { %v1013_v38 = vpop.eup %1012  ;;  %617 = vadd.xlane.f32.xlu1 %v616_v37 }
 0x1a5   : > { %641 = vadd.xlane.f32.xlu0 %v1013_v38 }
 0x22d   : > { %v618_v39 = vpop.xlane.xlu1 %617 }
 0x22e   : > { %v619_v40 = vadd.f32 %v1011_v35, %v618_v39  ;;  %v642_v41 = vpop.xlane.xlu0 %641 }
 0x22f   : > { %1014 = vlog2.f32 %v642_v41 }
 0x230   : > { %1016 = vlog2.f32 %v619_v40 }
 0x23c   : > { %v1015_v42 = vpop.eup %1014 }
 0x23d   : > { %v1017_v43 = vpop.eup %1016  ;;  %v644_v44 = vmul.f32 0.6931472, %v1015_v42 }
 0x23e   : > { %v621_v45 = vmul.f32 0.6931472, %v1017_v43 }
 0x23f   : > { %v645_v47 = vadd.f32 %v644_v44, %v637_v31 }
 0x240   : > { %v622_v48 = vsub.f32 %v621_v45, %v611_v29 }
 0x241   : > { %v653_v49 = vsub.f32 %v645_v47, %v635_v15 }
 0x242   : > { %v624_v50 = vmul.f32 %v622_v48, %v606_v27 }
 0x243   : > { %v654_v51 = vsel %vm651_vm6, %v653_v49, 0.0 }
 0x244   : > { %v625_v52 = vsel %vm607_vm1, %v624_v50, 0.0  ;;  %v655_v53 = vrot.slane %v654_v51, 4 }
 0x245   : > { %v626_v54 = vrot.slane %v625_v52, 4 }
 0x246   : > { %v656_v55 = vadd.f32 %v655_v53, %v654_v51 }
 0x247   : > { %v627_v56 = vadd.f32 %v626_v54, %v625_v52 }
 0x248   : > { %v657_v57 = vrot.slane %v656_v55, 2 }
 0x249   : > { %v628_v58 = vrot.slane %v627_v56, 2 }
 0x24a   : > { %v658_v59 = vadd.f32 %v657_v57, %v656_v55 }
 0x24b   : > { %v629_v60 = vadd.f32 %v628_v58, %v627_v56 }
 0x24c   : > { %v659_v61 = vrot.slane %v658_v59, 1 }
 0x24d   : > { %v630_v62 = vrot.slane %v629_v60, 1 }
 0x24e   : > { %v660_v0 = vadd.f32 %v659_v61, %v658_v59 }
 0x24f   : > { %v631_v2 = vadd.f32 %v630_v62, %v629_v60 }
 0x250   : > { %v661_v3 = vadd.f32 %v660_v0, %v652_v63 }
 0x251   : > { %v632_v4 = vadd.f32 %v631_v2, %v623_v1 }
 0x252   : > { %662 = vst [vmem:[#allocation3] sm:$0x1] %v661_v3 }
 0x253   : > { %634 = vst.msk [vmem:[#allocation2] sm:$0x1] %vm468_vm5, %v632_v4 }
 0x259   : > { %v671_v7 = vld [vmem:[#allocation3] sm:$0x1] }
 0x25a   : > { %v666_v5 = vld [vmem:[#allocation2] sm:$0x1]  ;;  %v673_v8 = vsel %vm672_vm7, %v671_v7, 0.0 }
 0x25b   : > { %v667_v6 = vsel %vm468_vm5, %v666_v5, 0.0 }
 0x25c   : > { %668 = vadd.xlane.f32.xlu0 %v667_v6 }
 0x260   : > { %674 = vadd.xlane.f32.xlu0 %v673_v8 }
 0x2e5   : > { %v669_v9 = vpop.xlane.xlu0 %668 }
 0x2e6   : > { %670 = vst [vmem:[%s425_s5] sm:$0x1] %v669_v9 }
 0x2e7   : > { %1031 = shalt.err (!%p1028_p7)
}
 0x2e8   : > { %s1032_s5 = scalar_lea.hbm %s1339_s18, 16  ;;  %s1036_s25 = scalar_lea.hbm %s1424_s8, 96 }
 0x2e9   : > { %p1033_p9 = scmp.ne.s32.totalorder %s1339_s18, %s1032_s5  ;;  %p1037_p12 = scmp.lt.s32.totalorder %s1339_s18, %s1424_s8 }
 0x2ea   : > { %p1038_p13 = scmp.lt.s32.totalorder %s1036_s25, %s1032_s5 }
 0x2eb   : > { %p1034_p10 = pnand %p1033_p9, %p1248_p3 }
 0x2ec   : > { %p1039_p0 = por %p1038_p13, %p1037_p12 }
 0x2ed   : > { %p1035_p11 = pneg %p1034_p10 }
 0x2ef   : > { %p1040_p1 = pnand %p1039_p0, %p1035_p11 }
 0x2f1   : > { %1043 = shalt.err (!%p1040_p1)
}
 0x2f2   : > { %921 = dma.vmem_to_hbm [thread:$0]  (%p1248_p3), %s1329_s20, 16, %s1339_s18, %s678_s12   ;;  %v675_v10 = vpop.xlane.xlu0 %674 }
 0x2f3   : > { %s1444_s13 = sshll.u32 %s1325_s29, 4  ;;  %s1445_s21 = scalar_lea.vmem [#allocation6], %s1322_s17 }
 0x2f4   : > { %s709_s19 = scalar_lea.hbm %s1425_s9, %s1444_s13  ;;  %676 = vst [vmem:[%s1445_s21] sm:$0x1] %v675_v10  ;;  %s682_s5 = scalar_lea.sflag [#allocation7], %s1322_s17 }
 0x2f5   : > { %s1044_s15 = scalar_lea.vmem %s1341_s24, 16  ;;  %s1146_s26 = smov [#allocation6]  }
 0x2f6   : > { %p1045_p2 = scmp.ne.s32.totalorder %s1341_s24, %s1044_s15  ;;  %s1048_s25 = sshll.u32 %s1146_s26, 4  ;;  %s1049_s25 = int_to_ptr.vmem [resolvable:$false] %s1048_s25 }
 0x2f7   : > { %s1050_s1 = scalar_lea.vmem %s1049_s25, 32  ;;  %p1051_p6 = scmp.lt.s32.totalorder %s1341_s24, %s1049_s25 }
 0x2f8   : > { %p1046_p4 = pnand %p1045_p2, %p1248_p3  ;;  %p1052_p7 = scmp.lt.s32.totalorder %s1050_s1, %s1044_s15 }
 0x2fa   : > { %p1047_p5 = pneg %p1046_p4  ;;  %p1053_p9 = por %p1052_p7, %p1051_p6 }
 0x2fc   : > { %p1054_p10 = pnand %p1053_p9, %p1047_p5 }
 0x2fe   : > { %1057 = shalt.err (!%p1054_p10)
}
 0x2ff   : > { %s1058_s29 = scalar_lea.hbm %s709_s19, 16  ;;  %s1062_s18 = scalar_lea.hbm %s1425_s9, 96 }
 0x300   : > { %p1059_p11 = scmp.ne.s32.totalorder %s709_s19, %s1058_s29  ;;  %p1063_p0 = scmp.lt.s32.totalorder %s709_s19, %s1425_s9 }
 0x301   : > { %p1064_p1 = scmp.lt.s32.totalorder %s1062_s18, %s1058_s29 }
 0x302   : > { %p1060_p12 = pnand %p1059_p11, %p1248_p3 }
 0x303   : > { %p1065_p2 = por %p1064_p1, %p1063_p0 }
 0x304   : > { %p1061_p13 = pneg %p1060_p12 }
 0x306   : > { %p1066_p4 = pnand %p1065_p2, %p1061_p13 }
 0x308   : > { %1069 = shalt.err (!%p1066_p4)
}
 0x309   : > { %922 = dma.vmem_to_hbm [thread:$0]  (%p1248_p3), %s1341_s24, 16, %s709_s19, %s682_s5  }
 0x30a PF: > { %p932_p5 = scmp.ge.s32.totalorder %s1140_s16, 2  ;;  %s723_s1 = sand.u32 1, %s1112_s30  }
 0x30b   : > { %s724_s28 = scalar_lea.sflag [#allocation5], %s723_s1 }
 0x30c   : > { %p926_p6 = pnand %p932_p5, %p1257_p8 }
 0x30e   : > { %p927_p7 = pneg %p926_p6 }
 0x310   : > { %1103 = dma.done.wait (%p927_p7), %s724_s28, 16  }
 0x311   : > { %1105 = vsyncadd (%p927_p7), %s724_s28, 4294967280  ;;  %s732_s0 = scalar_lea.sflag [#allocation7], %s723_s1 }
 0x312   : > { %1107 = dma.done.wait (%p927_p7), %s732_s0, 16  }
 0x313   : > { %1109 = vsyncadd (%p927_p7), %s732_s0, 4294967280  ;;  %s26_s16 = sadd.s32 1, %s1140_s16   ;;  %s1446_s13 = sld [smem:[#allocation10_spill]] }
 0x314   : > { %p23_p9 = scmp.ge.s32.totalorder %s26_s16, 8   ;;  %s1447_s22 = sld [smem:[#allocation11_spill]] }
 0x315   : > { %s1448_s15 = sld [smem:[#allocation12_spill]]  ;;  %s1449_s30 = smov %s1116_s10 }
 0x316   : > { %s1450_s10 = smov %s1120_s11  ;;  %s1451_s11 = smov %s1266_s27 }
 0x317   : > { %s1452_s12 = smov %s1132_s14  ;;  %25 = sbr.rel (!%p23_p9) target bundleno = 11 (0xb), region = 121 }
 0x31a   : > { %s1453_s14 = smov %s1447_s22 }
 0x31c   :  { %736 = vsyncpa [#allocation5], 1 }
 0x31d   :  { %738 = vsyncpa [#allocation5 + $0x1], 1 }
 0x31e   :  { %739 = vsyncpa [#allocation7], 1 }
 0x31f   :  { %741 = vsyncpa [#allocation7 + $0x1], 1 }

</bundles_post_ra>
